<compile_context>
chip_gen: v6e
topology: v6e:2x2x1
jax: 0.10.0
libtpu: 0.0.40
codegen_flags: <defaults>
</compile_context>

<pallas_src>
import jax
import jax.numpy as jnp
from jax.experimental import pallas as pl
from jax.experimental.pallas import tpu as pltpu


def ffn_kernel(x_ref, w1_ref, b1_ref, w2_ref, b2_ref, o_ref):
    # x_ref : (1, ed, TN)  bf16   channels on sublanes, pixels on lanes
    # w1_ref: (h, ed) bf16   b1_ref: (h, 1)  f32
    # w2_ref: (ed, h) bf16   b2_ref: (ed, 1) f32
    # o_ref : (1, ed, TN)  output dtype (f32 here)
    x = x_ref[0]                                                    # (ed, TN)
    hidden = jnp.dot(w1_ref[...], x,
                     preferred_element_type=jnp.float32)            # (h, TN) f32
    hidden = jnp.maximum(hidden + b1_ref[...], 0.0)                 # bias + ReLU in f32
    # Explicit choice: downcast post-ReLU activations to bf16 for the 2nd MXU pass.
    hidden = hidden.astype(w2_ref.dtype)
    out = jnp.dot(w2_ref[...], hidden,
                  preferred_element_type=jnp.float32)                # (ed, TN) f32
    out = out + b2_ref[...]
    o_ref[0] = out.astype(o_ref.dtype)


def _pick_tile_n(n_pix, target=2048):
    """Largest lane tile <= target dividing n_pix (prefer multiples of 128)."""
    if n_pix <= target:
        return n_pix
    best = None
    for t in range(128, target + 1, 128):
        if n_pix % t == 0:
            best = t
    return best if best is not None else n_pix


def ffn_pallas(x_nchw, w1, b1, w2, b2, *, tile_n=None,
               compute_dtype=jnp.bfloat16):
    """SHViT FFN forward (eval-mode BN already folded into the 1x1 convs).

    x_nchw: (B, ed, H, W)
    w1: (h, ed) fused pw1 weight, b1: (h,)  fused pw1 bias
    w2: (ed, h) fused pw2 weight, b2: (ed,) fused pw2 bias
    """
    B, ed, H, W = x_nchw.shape
    h = w1.shape[0]
    n_pix = H * W
    out_dtype = x_nchw.dtype

    # NCHW is already (channels, pixels) per image once H,W are merged -> zero-copy.
    # (In a full model the producer would already emit bf16; here the cast is tiny.)
    x3d = x_nchw.reshape(B, ed, n_pix).astype(compute_dtype)

    if tile_n is None:
        tile_n = _pick_tile_n(n_pix)
    assert n_pix % tile_n == 0, "tile_n must divide H*W"
    # TODO(synk): no remainder-tile path; non-dividing H*W would need a masked last tile.

    w1c = w1.astype(compute_dtype)
    w2c = w2.astype(compute_dtype)
    b1c = b1.reshape(h, 1).astype(jnp.float32)    # biases stay f32 (post-accum add)
    b2c = b2.reshape(ed, 1).astype(jnp.float32)

    grid = (B, n_pix // tile_n)

    out3d = pl.pallas_call(
        ffn_kernel,
        out_shape=jax.ShapeDtypeStruct((B, ed, n_pix), out_dtype),
        grid_spec=pltpu.PrefetchScalarGridSpec(
            num_scalar_prefetch=0,
            grid=grid,
            in_specs=[
                pl.BlockSpec((1, ed, tile_n), lambda b, i: (b, 0, i)),  # x tile
                pl.BlockSpec((h, ed), lambda b, i: (0, 0)),             # fused W1
                pl.BlockSpec((h, 1), lambda b, i: (0, 0)),              # fused b1
                pl.BlockSpec((ed, h), lambda b, i: (0, 0)),             # fused W2
                pl.BlockSpec((ed, 1), lambda b, i: (0, 0)),             # fused b2
            ],
            out_specs=pl.BlockSpec((1, ed, tile_n), lambda b, i: (b, 0, i)),
        ),
        compiler_params=pltpu.CompilerParams(
            dimension_semantics=("parallel", "parallel")),
    )(x3d, w1c, b1c, w2c, b2c)

    return out3d.reshape(B, ed, H, W)


def fuse_conv_bn(conv_w, gamma, beta, running_mean, running_var, eps=1e-5):
    """Fold BN (eval / running stats) into a 1x1 conv.

    conv_w: (out_c, in_c).  Returns (W, b) with W: (out_c, in_c), b: (out_c,)
    such that y = W @ x + b (per pixel) reproduces BN(conv(x)).
    """
    scale = gamma / jnp.sqrt(running_var + eps)            # (out_c,)
    w_fused = conv_w * scale[:, None]                      # (out_c, in_c)
    b_fused = beta - running_mean * scale                  # (out_c,)
    return w_fused, b_fused


if __name__ == "__main__":
    # Small shapes consistent with the module: B=2, ed=16, hidden=32, 16x16 spatial.
    B, ed, hid, H, W = 2, 16, 32, 16, 16

    key = jax.random.PRNGKey(0)
    ks = jax.random.split(key, 11)

    x = jax.random.normal(ks[0], (B, ed, H, W), dtype=jnp.float32)

    # pw1: Conv2d(ed -> hid, 1x1, bias=False) + BN(hid)
    conv1_w = jax.random.normal(ks[1], (hid, ed), dtype=jnp.float32) * 0.1
    bn1_gamma = jax.random.normal(ks[2], (hid,), dtype=jnp.float32) * 0.1 + 1.0
    bn1_beta = jax.random.normal(ks[3], (hid,), dtype=jnp.float32) * 0.1
    bn1_mean = jax.random.normal(ks[4], (hid,), dtype=jnp.float32) * 0.1
    bn1_var = jax.random.uniform(ks[5], (hid,), dtype=jnp.float32, minval=0.5, maxval=1.5)

    # pw2: Conv2d(hid -> ed, 1x1, bias=False) + BN(ed)
    # NOTE: the module inits pw2's BN weight to 0; random BN params are used here
    # so the kernel exercises a non-degenerate path (values are synthetic anyway).
    conv2_w = jax.random.normal(ks[6], (ed, hid), dtype=jnp.float32) * 0.1
    bn2_gamma = jax.random.normal(ks[7], (ed,), dtype=jnp.float32) * 0.1 + 1.0
    bn2_beta = jax.random.normal(ks[8], (ed,), dtype=jnp.float32) * 0.1
    bn2_mean = jax.random.normal(ks[9], (ed,), dtype=jnp.float32) * 0.1
    bn2_var = jax.random.uniform(ks[10], (ed,), dtype=jnp.float32, minval=0.5, maxval=1.5)

    w1, b1 = fuse_conv_bn(conv1_w, bn1_gamma, bn1_beta, bn1_mean, bn1_var)
    w2, b2 = fuse_conv_bn(conv2_w, bn2_gamma, bn2_beta, bn2_mean, bn2_var)

    out = ffn_pallas(x, w1, b1, w2, b2)
    out = jax.block_until_ready(out)
    assert out.shape == x.shape

    # Pure-JAX reference with matching bf16 storage / f32 accumulation semantics.
    xr = x.reshape(B, ed, H * W).astype(jnp.bfloat16).astype(jnp.float32)
    w1r = w1.astype(jnp.bfloat16).astype(jnp.float32)
    w2r = w2.astype(jnp.bfloat16).astype(jnp.float32)
    hid_ref = jnp.maximum(jnp.einsum("he,ben->bhn", w1r, xr) + b1[None, :, None], 0.0)
    hid_ref = hid_ref.astype(jnp.bfloat16).astype(jnp.float32)
    ref = jnp.einsum("eh,bhn->ben", w2r, hid_ref) + b2[None, :, None]
    ref = ref.reshape(B, ed, H, W)

    assert jnp.allclose(out, ref, atol=1e-2, rtol=1e-2), "mismatch vs reference"

    print("KERNEL_OK")
</pallas_src>

<mosaic_0001>
module attributes {stable_mosaic.version = 11 : i64} {
  func.func @ffn_kernel(%arg0: i32, %arg1: i32, %arg2: memref<1x16x256xbf16, #tpu.memory_space<vmem>>, %arg3: memref<32x16xbf16, #tpu.memory_space<vmem>>, %arg4: memref<32x1xf32, #tpu.memory_space<vmem>>, %arg5: memref<16x32xbf16, #tpu.memory_space<vmem>>, %arg6: memref<16x1xf32, #tpu.memory_space<vmem>>, %arg7: memref<1x16x256xf32, #tpu.memory_space<vmem>>) attributes {dimension_semantics = [#tpu.dimension_semantics<parallel>, #tpu.dimension_semantics<parallel>], iteration_bounds = array<i64: 2, 1>, scalar_prefetch = 0 : i64, scratch_operands = 0 : i64, tpu.core_type = #tpu.core_type<tc>, window_params = [{transform_indices = @transform_0, window_bounds = array<i64: 1, 16, 256>}, {pipeline_mode = #tpu.pipeline_mode<synchronous>, transform_indices = @transform_1, window_bounds = array<i64: 32, 16>}, {pipeline_mode = #tpu.pipeline_mode<synchronous>, transform_indices = @transform_2, window_bounds = array<i64: 32, 1>}, {pipeline_mode = #tpu.pipeline_mode<synchronous>, transform_indices = @transform_3, window_bounds = array<i64: 16, 32>}, {pipeline_mode = #tpu.pipeline_mode<synchronous>, transform_indices = @transform_4, window_bounds = array<i64: 16, 1>}, {transform_indices = @transform_5, window_bounds = array<i64: 1, 16, 256>}]} {
    %c0 = arith.constant 0 : index
    %c0_0 = arith.constant 0 : index
    %c0_1 = arith.constant 0 : index
    %0 = vector.load %arg2[%c0, %c0_0, %c0_1] : memref<1x16x256xbf16, #tpu.memory_space<vmem>>, vector<1x16x256xbf16>
    %1 = vector.shape_cast %0 : vector<1x16x256xbf16> to vector<16x256xbf16>
    %c0_2 = arith.constant 0 : index
    %c0_3 = arith.constant 0 : index
    %2 = vector.load %arg3[%c0_2, %c0_3] : memref<32x16xbf16, #tpu.memory_space<vmem>>, vector<32x16xbf16>
    %cst = arith.constant dense<0.000000e+00> : vector<32x256xf32>
    %3 = tpu.matmul %2, %1, %cst {dimension_numbers = #tpu.dot_dimension_numbers<[1], [0], [0], [1], [0, 0, 1, 1], [], []>} : vector<32x16xbf16>, vector<16x256xbf16>, vector<32x256xf32> -> vector<32x256xf32>
    %c0_4 = arith.constant 0 : index
    %c0_5 = arith.constant 0 : index
    %4 = vector.load %arg4[%c0_4, %c0_5] : memref<32x1xf32, #tpu.memory_space<vmem>>, vector<32x1xf32>
    %5 = vector.broadcast %4 : vector<32x1xf32> to vector<32x256xf32>
    %6 = arith.addf %3, %5 : vector<32x256xf32>
    %cst_6 = arith.constant 0.000000e+00 : f32
    %7 = vector.broadcast %cst_6 : f32 to vector<32x256xf32>
    %8 = arith.maximumf %6, %7 : vector<32x256xf32>
    %9 = arith.truncf %8 : vector<32x256xf32> to vector<32x256xbf16>
    %c0_7 = arith.constant 0 : index
    %c0_8 = arith.constant 0 : index
    %10 = vector.load %arg5[%c0_7, %c0_8] : memref<16x32xbf16, #tpu.memory_space<vmem>>, vector<16x32xbf16>
    %cst_9 = arith.constant dense<0.000000e+00> : vector<16x256xf32>
    %11 = tpu.matmul %10, %9, %cst_9 {dimension_numbers = #tpu.dot_dimension_numbers<[1], [0], [0], [1], [0, 0, 1, 1], [], []>} : vector<16x32xbf16>, vector<32x256xbf16>, vector<16x256xf32> -> vector<16x256xf32>
    %c0_10 = arith.constant 0 : index
    %c0_11 = arith.constant 0 : index
    %12 = vector.load %arg6[%c0_10, %c0_11] : memref<16x1xf32, #tpu.memory_space<vmem>>, vector<16x1xf32>
    %13 = vector.broadcast %12 : vector<16x1xf32> to vector<16x256xf32>
    %14 = arith.addf %11, %13 : vector<16x256xf32>
    %c0_12 = arith.constant 0 : index
    %c0_13 = arith.constant 0 : index
    %c0_14 = arith.constant 0 : index
    %15 = vector.load %arg7[%c0_12, %c0_13, %c0_14] : memref<1x16x256xf32, #tpu.memory_space<vmem>>, vector<1x16x256xf32>
    %16 = vector.shape_cast %15 : vector<1x16x256xf32> to vector<16x256xf32>
    %17 = vector.shape_cast %14 : vector<16x256xf32> to vector<1x16x256xf32>
    tpu.vector_store %arg7[%c0_12, %c0_13, %c0_14], %17 {strides = array<i32>} : memref<1x16x256xf32, #tpu.memory_space<vmem>>, vector<1x16x256xf32>,
    return
  }
  func.func @transform_0(%arg0: i32, %arg1: i32) -> (i32, i32, i32) {
    %c0_i32 = arith.constant 0 : i32
    %c0_i32_0 = arith.constant 0 : i32
    return %arg0, %c0_i32, %arg1 : i32, i32, i32
  }
  func.func @transform_1(%arg0: i32, %arg1: i32) -> (i32, i32) {
    %c0_i32 = arith.constant 0 : i32
    %c0_i32_0 = arith.constant 0 : i32
    %c0_i32_1 = arith.constant 0 : i32
    return %c0_i32, %c0_i32_0 : i32, i32
  }
  func.func @transform_2(%arg0: i32, %arg1: i32) -> (i32, i32) {
    %c0_i32 = arith.constant 0 : i32
    %c0_i32_0 = arith.constant 0 : i32
    %c0_i32_1 = arith.constant 0 : i32
    return %c0_i32, %c0_i32_0 : i32, i32
  }
  func.func @transform_3(%arg0: i32, %arg1: i32) -> (i32, i32) {
    %c0_i32 = arith.constant 0 : i32
    %c0_i32_0 = arith.constant 0 : i32
    %c0_i32_1 = arith.constant 0 : i32
    return %c0_i32, %c0_i32_0 : i32, i32
  }
  func.func @transform_4(%arg0: i32, %arg1: i32) -> (i32, i32) {
    %c0_i32 = arith.constant 0 : i32
    %c0_i32_0 = arith.constant 0 : i32
    %c0_i32_1 = arith.constant 0 : i32
    return %c0_i32, %c0_i32_0 : i32, i32
  }
  func.func @transform_5(%arg0: i32, %arg1: i32) -> (i32, i32, i32) {
    %c0_i32 = arith.constant 0 : i32
    %c0_i32_0 = arith.constant 0 : i32
    return %arg0, %c0_i32, %arg1 : i32, i32, i32
  }
}

</mosaic_0001>

<bundles_post_ra>
// kernel: tpu_custom_call.1
= control target key start
LH: loop header
LB: loop body
LE: loop exit
PB: predicated region body
PF: predicated region fallthrough
CT: control target
= control target key end

     0   :  { %10 = vsyncpa [#allocation3], 0  ;;  %s884_s0 = inlined_call_operand.vmem [shape: bf16[2,16,256], index: 0, kind: input, shape index: {}]   ;;  %s885_s1 = inlined_call_operand.vmem [shape: bf16[32,16], index: 1, kind: input, shape index: {}]   ;;  %s886_s2 = inlined_call_operand.vmem [shape: f32[32,1], index: 2, kind: input, shape index: {}]   ;;  %s887_s3 = inlined_call_operand.vmem [shape: bf16[16,32], index: 3, kind: input, shape index: {}]   ;;  %s888_s4 = inlined_call_operand.vmem [shape: f32[16,1], index: 4, kind: input, shape index: {}]   ;;  %s889_s5 = inlined_call_operand.hbm [shape: f32[2,16,256], index: 5, kind: output, shape index: {}]  }
   0x1   :  { %12 = vsyncpa [#allocation3 + $0x1], 0  ;;  %s743_s18 = smov 0   ;;  %s745_s19 = smov 0  }
   0x2   :  { %s747_s20 = smov 0   ;;  %s749_s21 = smov 0  }
   0x3   :  { %s751_s22 = smov 0   ;;  %s753_s23 = smov 0  }
   0x4 LB: > { %s542_s24 = sadd.s32 4294967295, %s707_s23   ;;  %s543_s25 = sadd.s32 4294967294, %s707_s23   ;;  %s707_s23 = sphi %s753_s23, %s18_s23   ;;  %s703_s22 = sphi %s751_s22, %s896_s22   ;;  %s699_s21 = sphi %s749_s21, %s895_s21   ;;  %s695_s20 = sphi %s747_s20, %s894_s20   ;;  %s691_s19 = sphi %s745_s19, %s893_s19   ;;  %s687_s18 = sphi %s743_s18, %s892_s18  }
   0x5   : > { %s30_s26 = sadd.s32 1, %s703_s22  ;;  %s151_s27 = sadd.s32 1, %s695_s20 }
   0x6   : > { %p32_p0 = scmp.ge.s32.totalorder %s30_s26, 2  ;;  %p161_p1 = scmp.ne.s32.totalorder %s695_s20, %s691_s19 }
   0x7   : > { %p162_p2 = scmp.eq.s32.totalorder %s542_s24, 1  ;;  %p167_p3 = scmp.ne.s32.totalorder %s691_s19, %s687_s18 }
   0x8   : > { %s898_s26 = smov (%p32_p0, %s30_s26), 0  ;;  %p168_p5 = scmp.eq.s32.totalorder %s543_s25, 1 }
   0x9   : > { %p783_p4 = por %p162_p2, %p161_p1  ;;  %s146_s29 = ssub.s32 %s703_s22, %s898_s26 }
   0xa   : > { %p546_p6 = scmp.ge.s32.totalorder %s707_s23, 1  ;;  %p149_p7 = scmp.eq.s32.totalorder %s146_s29, 0 }
   0xb   : > { %p790_p8 = por %p168_p5, %p167_p3  ;;  %p211_p9 = scmp.lt.s32.totalorder %s707_s23, 3 }
   0xc   : > { %s796_s6 = scalar_select %p149_p7, %s695_s20, %s151_s27  }
   0xd   : > { %p212_p10 = pnand %p546_p6, %p211_p9 }
   0xe   : > { %p244_p11 = scmp.lt.s32.totalorder (!%p212_p10), %s699_s21, 1  ;;  %s240_s15 = sand.u32 (!%p212_p10), 1, %s691_s19  }
   0xf   : > { %215 = sbr.rel (%p212_p10) target bundleno = 465 (0x1d1), region = 40  ;;  %s547_s16 = sshll.u32 (!%p212_p10), %s240_s15, 5 }
  0x10   : > { %s242_s17 = scalar_lea.vmem (!%p212_p10), [#allocation2], %s547_s16  ;;  %s839_s9 = scalar_lea.sflag (!%p212_p10), [#allocation3], %s240_s15 }
  0x11   : > { %s463_s24 = sshll.u32 (!%p212_p10), %s242_s17, 4  ;;  %s832_s24 = int_to_ptr.vmem [resolvable:$true] %s463_s24 }
  0x14   : > { %v709_v0 = vmov 0   ;;  %s245_s7 = scalar_select %p244_p11, %s699_s21, 1  ;;  %v261_v1 = vld [vmem:[%s886_s2] sm:$0xff]  ;;  %v263_v2 = vld [vmem:[%s886_s2 + $0x10] sm:$0xff]  ;;  %v262_v3 = vld [vmem:[%s886_s2 + $0x8] sm:$0xff]  ;;  %vm305_vm0 = vcmask 130048  }
  0x15   : > { %344 = vmatprep.mubr.bf16.mxu0 %v709_v0  ;;  %624 = vset.pattern.permute.xlu1 %v709_v0  ;;  %v264_v4 = vld [vmem:[%s886_s2 + $0x18] sm:$0xff]  ;;  %v628_v7 = vld [vmem:[%s885_s1] sm:$0xff]   ;;  %v380_v9 = vld [vmem:[%s888_s4 + $0x8] sm:$0xff]  ;;  %vm396_vm1 = vcmask 261120  }
  0x16   : > { %623 = vset.pattern.permute.xlu0 %v709_v0  ;;  %432 = vmatprep.mubr.bf16.mxu1 %v709_v0  ;;  %s563_s14 = sshll.u32 %s245_s7, 4  ;;  %v379_v8 = vld [vmem:[%s888_s4] sm:$0xff]  ;;  %v629_v10 = vld [vmem:[%s885_s1 + $0x8] sm:$0xff]   ;;  %s710_s7 = smov [#allocation2]  }
  0x17   : > { %267 = vperm.xlu1 %624, %v261_v1   ;;  %277 = vperm.xlu0 %623, %v263_v2   ;;  %s251_s25 = scalar_lea.vmem %s884_s0, %s563_s14  ;;  %v630_v43 = vld [vmem:[%s887_s3] sm:$0xff]   ;;  %s635_s10 = sshll.u32 %s710_s7, 4  ;;  %s636_s10 = int_to_ptr.vmem [resolvable:$false] %s635_s10 }
  0x18   : > { %v625_v5 = vld [vmem:[%s251_s25 + $0x4] ss:$8 sps:$4 sm:$0xff]   ;;  %v627_v6 = vld [vmem:[%s251_s25] ss:$8 sps:$4 sm:$0xff]   ;;  %s564_s25 = sshll.u32 %s699_s21, 9  ;;  %s631_s21 = scalar_lea.vmem %s832_s24, 512 }
  0x19   : > { %326 = vmatprep.subr.bf16.mxu0 %v625_v5  ;;  %s837_s8 = scalar_lea.hbm %s889_s5, %s564_s25  ;;  %p632_p12 = scmp.ne.s32.totalorder %s832_s24, %s631_s21 }
  0x1a   : > { %327 = vmatpush1.bf16.msra.mxu0 %v627_v6  ;;  %s637_s11 = scalar_lea.vmem %s636_s10, 1024  ;;  %p638_p1 = scmp.lt.s32.totalorder %s832_s24, %s636_s10 }
  0x1b   : > { %272 = vperm.xlu1 %624, %v262_v3   ;;  %282 = vperm.xlu0 %623, %v264_v4   ;;  %p633_p13 = pnand %p632_p12, %p783_p4  ;;  %p639_p2 = scmp.lt.s32.totalorder %s637_s11, %s631_s21 }
  0x1d   : > { %554 = vmatmul.mubr.msk.bf16.vlgmr.msra.gmra.mxu0 %vm305_vm0, %v628_v7  ;;  %p634_p0 = pneg %p633_p13  ;;  %p640_p3 = por %p639_p2, %p638_p1 }
  0x1e   : > { %354 = vmatprep.mubr.bf16.mxu0 %v709_v0 }
  0x1f   : > { %383 = vperm.xlu0 %623, %v379_v8   ;;  %388 = vperm.xlu1 %624, %v380_v9   ;;  %p641_p5 = pnand %p640_p3, %p634_p0 }
  0x25   : > { %555 = vmatmul.mubr.msk.bf16.gmra.mxu0 %vm305_vm0, %v629_v10 }
  0x92   : > { %v268_v14 = vpop.permute.xlu1 %267  ;;  %v278_v15 = vpop.permute.xlu0 %277 }
  0x96   : > { %v273_v19 = vpop.permute.xlu1 %272  ;;  %v283_v20 = vpop.permute.xlu0 %282 }
  0x9a   : > { %v384_v44 = vpop.permute.xlu0 %383  ;;  %v389_v49 = vpop.permute.xlu1 %388 }
  0xdd   : > { %v346_v11 = vpop.f32.mrf.mxu0 }
  0xde   : > { %v347_v34 = vadd.f32 %v346_v11, %v268_v14 }
  0xdf   : > { %v348_v12 = vpop.f32.mrf.mxu0 }
  0xe0   : > { %v349_v27 = vadd.f32 %v348_v12, %v268_v14  ;;  %v365_v41 = vmax.f32 %v347_v34, 0.0 }
  0xe1   : > { %v350_v13 = vpop.f32.mrf.mxu0 }
  0xe2   : > { %v351_v29 = vadd.f32 %v350_v13, %v273_v19  ;;  %v366_v36 = vmax.f32 %v349_v27, 0.0 }
  0xe3   : > { %v352_v16 = vpop.f32.mrf.mxu0 }
  0xe4   : > { %v353_v22 = vadd.f32 %v352_v16, %v273_v19  ;;  %v367_v38 = vmax.f32 %v351_v29, 0.0 }
  0xe5   : > { %v356_v17 = vpop.f32.mrf.mxu0 }
  0xe6   : > { %v357_v25 = vadd.f32 %v356_v17, %v278_v15  ;;  %v368_v31 = vmax.f32 %v353_v22, 0.0  ;;  %v373_v42 = vpack.c.bf16 %v367_v38, %v365_v41 }
  0xe7   : > { %v358_v18 = vpop.f32.mrf.mxu0 }
  0xe8   : > { %v359_v23 = vadd.f32 %v358_v18, %v278_v15  ;;  %v369_v35 = vmax.f32 %v357_v25, 0.0  ;;  %v374_v40 = vpack.c.bf16 %v368_v31, %v366_v36 }
  0xe9   : > { %v360_v21 = vpop.f32.mrf.mxu0 }
  0xea   : > { %v361_v24 = vadd.f32 %v360_v21, %v283_v20  ;;  %v370_v32 = vmax.f32 %v359_v23, 0.0 }
  0xeb   : > { %v362_v26 = vpop.f32.mrf.mxu0 }
  0xec   : > { %v363_v28 = vadd.f32 %v362_v26, %v283_v20  ;;  %v371_v30 = vmax.f32 %v361_v24, 0.0 }
  0xee   : > { %v372_v33 = vmax.f32 %v363_v28, 0.0  ;;  %v375_v39 = vpack.c.bf16 %v371_v30, %v369_v35 }
  0xf0   : > { %v376_v37 = vpack.c.bf16 %v372_v33, %v370_v32 }
  0xf2   : > { %412 = vmatprep.subr.bf16.mxu1 %v376_v37 }
  0xf3   : > { %413 = vmatpush1.bf16.msra.mxu1 %v375_v39 }
  0xf4   : > { %414 = vmatprep.subr.bf16.mxu1 %v374_v40 }
  0xf7   : > { %415 = vmatpush1.bf16.msra.mxu1 %v373_v42 }
  0xfa   : > { %557 = vmatmul.mubr.msk.bf16.vlgmr.msra.gmra.mxu1 %vm396_vm1, %v630_v43 }
 0x1ba   : > { %v434_v45 = vpop.f32.mrf.mxu1 }
 0x1bb   : > { %v435_v46 = vadd.f32 %v434_v45, %v384_v44 }
 0x1bc   : > { %v436_v47 = vpop.f32.mrf.mxu1 }
 0x1bd   : > { %443 = vst [vmem:[%s242_s17] sm:$0xff] %v435_v46  ;;  %v437_v48 = vadd.f32 %v436_v47, %v384_v44 }
 0x1be   : > { %v438_v50 = vpop.f32.mrf.mxu1 }
 0x1bf   : > { %444 = vst [vmem:[%s242_s17 + $0x8] sm:$0xff] %v437_v48  ;;  %v439_v51 = vadd.f32 %v438_v50, %v389_v49 }
 0x1c0   : > { %v440_v52 = vpop.f32.mrf.mxu1 }
 0x1c1   : > { %445 = vst [vmem:[%s242_s17 + $0x10] sm:$0xff] %v439_v51  ;;  %v441_v53 = vadd.f32 %v440_v52, %v389_v49 }
 0x1c3   : > { %446 = vst [vmem:[%s242_s17 + $0x18] sm:$0xff] %v441_v53 }
 0x1c4   : > { %644 = shalt.err (!%p641_p5)
}
 0x1c5   : > { %s645_s12 = scalar_lea.hbm %s837_s8, 512  ;;  %s649_s15 = scalar_lea.hbm %s889_s5, 1024 }
 0x1c6   : > { %p646_p6 = scmp.ne.s32.totalorder %s837_s8, %s645_s12  ;;  %p650_p10 = scmp.lt.s32.totalorder %s837_s8, %s889_s5 }
 0x1c7   : > { %p651_p11 = scmp.lt.s32.totalorder %s649_s15, %s645_s12 }
 0x1c8   : > { %p647_p7 = pnand %p646_p6, %p783_p4 }
 0x1c9   : > { %p652_p12 = por %p651_p11, %p650_p10 }
 0x1ca   : > { %p648_p9 = pneg %p647_p7 }
 0x1cc   : > { %p653_p13 = pnand %p652_p12, %p648_p9 }
 0x1ce   : > { %656 = shalt.err (!%p653_p13)
}
 0x1cf   : > { %s711_s25 = smov 256   ;;  %s712_s27 = smov 16  }
 0x1d0   : > { %565 = dma.vmem_to_hbm [thread:$0]  (%p783_p4), %s832_s24, 512, %s837_s8, %s839_s9, %s711_s25, %s711_s25, %s712_s27  }
 0x1d1 PF: > { %p571_p0 = scmp.ge.s32.totalorder %s707_s23, 2  ;;  %s478_s29 = sand.u32 1, %s687_s18  }
 0x1d2   : > { %s479_s21 = scalar_lea.sflag [#allocation3], %s478_s29 }
 0x1d3   : > { %p568_p1 = pnand %p571_p0, %p790_p8 }
 0x1d5   : > { %p569_p2 = pneg %p568_p1 }
 0x1d7   : > { %682 = dma.done.wait (%p569_p2), %s479_s21, 512  }
 0x1d8   : > { %684 = vsyncadd (%p569_p2), %s479_s21, 4294966784  ;;  %s18_s23 = sadd.s32 1, %s707_s23   ;;  %s892_s18 = smov %s691_s19 }
 0x1d9   : > { %p15_p3 = scmp.ge.s32.totalorder %s18_s23, 4   ;;  %s893_s19 = smov %s695_s20 }
 0x1da   : > { %s894_s20 = smov %s796_s6  ;;  %s895_s21 = smov %s703_s22 }
 0x1db   : > { %s896_s22 = smov %s898_s26  ;;  %17 = sbr.rel (!%p15_p3) target bundleno = 4 (0x4), region = 75 }
 0x1e0   :  { %484 = vsyncpa [#allocation3], 1 }
 0x1e1   :  { %486 = vsyncpa [#allocation3 + $0x1], 1 }

</bundles_post_ra>
